<compile_context>
chip_gen: v5e
topology: v5e:2x2
jax: 0.10.0
libtpu: 0.0.40
codegen_flags: <defaults>
</compile_context>

<pallas_src>
import functools

import jax
import jax.numpy as jnp
from jax.experimental import pallas as pl
from jax.experimental.pallas import tpu as pltpu


def _round_up(x, m):
    return (x + m - 1) // m * m


def _pad2d(x, rows, cols):
    return jnp.zeros((rows, cols), x.dtype).at[: x.shape[0], : x.shape[1]].set(x)


def _layer1(state_ref, action_ref, w1_ref, b1_ref):
    # In-kernel lane concat (cheap XLU shifts) -> one fused MXU dot for both
    # twin nets' first layers.
    sa = jnp.concatenate([state_ref[...], action_ref[...]],
                         axis=-1).astype(jnp.bfloat16)
    h1 = jnp.dot(sa, w1_ref[...], preferred_element_type=jnp.float32)
    return jnp.maximum(h1 + b1_ref[...], 0.0)          # bias + ReLU in f32


def _twinq_kernel_fused_l2(state_ref, action_ref,
                           w1_ref, b1_ref, w2_ref, b2_ref, w3_ref, b3_ref,
                           out_ref, *, hidden_pad):
    # H_pad <= 128: layer 2 is one block-diagonal (2H_pad, 2H_pad) dot.
    Hp = hidden_pad
    h1 = _layer1(state_ref, action_ref, w1_ref, b1_ref)          # (TM, 2Hp)
    h2 = jnp.maximum(
        jnp.dot(h1.astype(jnp.bfloat16), w2_ref[...],
                preferred_element_type=jnp.float32) + b2_ref[...], 0.0)
    prod = h2 * w3_ref[...]                                      # VPU heads
    q1 = jnp.sum(prod[:, :Hp], axis=-1, keepdims=True) + b3_ref[:, 0:1]
    q2 = jnp.sum(prod[:, Hp:], axis=-1, keepdims=True) + b3_ref[:, 1:2]
    out_ref[...] = jnp.minimum(q1, q2)                           # torch.min


def _twinq_kernel_split_l2(state_ref, action_ref,
                           w1_ref, b1_ref,
                           w2a_ref, w2b_ref, b2a_ref, b2b_ref,
                           w3a_ref, w3b_ref, b3_ref,
                           out_ref, *, hidden_pad):
    # H_pad >= 256: per-net layer-2 dots (block-diag would waste 2x MXU).
    Hp = hidden_pad
    h1 = _layer1(state_ref, action_ref, w1_ref, b1_ref)          # (TM, 2Hp)
    h1a = h1[:, :Hp].astype(jnp.bfloat16)   # 128-aligned slice -> free view
    h1b = h1[:, Hp:].astype(jnp.bfloat16)
    h2a = jnp.maximum(
        jnp.dot(h1a, w2a_ref[...], preferred_element_type=jnp.float32)
        + b2a_ref[...], 0.0)
    h2b = jnp.maximum(
        jnp.dot(h1b, w2b_ref[...], preferred_element_type=jnp.float32)
        + b2b_ref[...], 0.0)
    # Output heads on the VPU: multiply by packed (1, Hp) row, reduce lanes.
    q1 = jnp.sum(h2a * w3a_ref[...], axis=-1, keepdims=True) + b3_ref[:, 0:1]
    q2 = jnp.sum(h2b * w3b_ref[...], axis=-1, keepdims=True) + b3_ref[:, 1:2]
    out_ref[...] = jnp.minimum(q1, q2)


def pack_twinq_params(params):
    """One-time packing: fuse twin layer-1, pad H to a multiple of 128,
    block-diag layer-2 fusion when H <= 128, bf16 matmul weights."""
    p1, p2 = params["q1"], params["q2"]
    D, H = p1["w1"].shape
    Hp = _round_up(H, 128)
    fuse_l2 = Hp <= 128      # one 256-wide MXU pass for layer 2 on v6e/v7x

    # Layer 1: both nets fused along the output dim, zero-padded to 2*Hp.
    w1 = jnp.zeros((D, 2 * Hp), jnp.float32)
    w1 = w1.at[:, :H].set(p1["w1"]).at[:, Hp:Hp + H].set(p2["w1"])
    b1 = jnp.zeros((1, 2 * Hp), jnp.float32)
    b1 = b1.at[:, :H].set(p1["b1"]).at[:, Hp:Hp + H].set(p2["b1"])

    packed = {
        "hidden_pad": Hp,
        "fuse_l2": fuse_l2,
        "w1": w1.astype(jnp.bfloat16),                        # (D, 2Hp)
        "b1": b1,                                             # (1, 2Hp) f32
        "b3": jnp.concatenate([p1["b3"], p2["b3"]], axis=1),  # (1, 2) f32
    }

    if fuse_l2:
        w2 = jnp.zeros((2 * Hp, 2 * Hp), jnp.float32)
        w2 = w2.at[:H, :H].set(p1["w2"]).at[Hp:Hp + H, Hp:Hp + H].set(p2["w2"])
        b2 = jnp.zeros((1, 2 * Hp), jnp.float32)
        b2 = b2.at[:, :H].set(p1["b2"]).at[:, Hp:Hp + H].set(p2["b2"])
        w3 = jnp.zeros((1, 2 * Hp), jnp.float32)
        w3 = w3.at[:, :H].set(p1["w3"].T).at[:, Hp:Hp + H].set(p2["w3"].T)
        packed.update(w2=w2.astype(jnp.bfloat16), b2=b2, w3=w3)
    else:
        packed.update(
            w2a=_pad2d(p1["w2"], Hp, Hp).astype(jnp.bfloat16),
            w2b=_pad2d(p2["w2"], Hp, Hp).astype(jnp.bfloat16),
            b2a=_pad2d(p1["b2"], 1, Hp),
            b2b=_pad2d(p2["b2"], 1, Hp),
            w3a=_pad2d(p1["w3"].T, 1, Hp),
            w3b=_pad2d(p2["w3"].T, 1, Hp))
    return packed


def twin_q_forward(state, action, packed, *, block_b=1024):
    """Pallas TwinQ forward: returns min(q1(sa), q2(sa)) with shape (B,)."""
    B, S = state.shape
    _, A = action.shape
    Hp = packed["hidden_pad"]

    # Batch tile: big tiles amortize grid/DMA overhead; padded to mult. of 8.
    TM = block_b if B >= block_b else _round_up(B, 8)
    B_pad = _round_up(B, TM)
    if B_pad != B:
        state = jnp.pad(state, ((0, B_pad - B), (0, 0)))
        action = jnp.pad(action, ((0, B_pad - B), (0, 0)))
    grid = (B_pad // TM,)

    if packed["fuse_l2"]:
        weight_names = ("w1", "b1", "w2", "b2", "w3", "b3")
        kernel = functools.partial(_twinq_kernel_fused_l2, hidden_pad=Hp)
    else:
        weight_names = ("w1", "b1", "w2a", "w2b", "b2a", "b2b",
                        "w3a", "w3b", "b3")
        kernel = functools.partial(_twinq_kernel_split_l2, hidden_pad=Hp)
    weights = [packed[k] for k in weight_names]

    in_specs = [
        pl.BlockSpec((TM, S), lambda i: (i, 0)),     # state tile (streamed)
        pl.BlockSpec((TM, A), lambda i: (i, 0)),     # action tile (streamed)
    ]
    # Weights/biases: full blocks with a constant index -> DMA'd once,
    # resident in VMEM across all grid steps.
    in_specs += [pl.BlockSpec(w.shape, lambda i: (0, 0)) for w in weights]

    out = pl.pallas_call(
        kernel,
        out_shape=jax.ShapeDtypeStruct((B_pad, 1), jnp.float32),
        grid=grid,
        in_specs=in_specs,
        out_specs=pl.BlockSpec((TM, 1), lambda i: (i, 0)),
        compiler_params=pltpu.CompilerParams(
            dimension_semantics=("parallel",)),
    )(state, action, *weights)

    return out[:B, 0]                                 # Squeeze(-1)


def _linear_init(key, fan_in, fan_out):
    # PyTorch nn.Linear-style uniform init: U(-1/sqrt(fan_in), +1/sqrt(fan_in)).
    kw, kb = jax.random.split(key)
    bound = 1.0 / jnp.sqrt(jnp.float32(fan_in))
    w = jax.random.uniform(kw, (fan_in, fan_out), jnp.float32, -bound, bound)
    b = jax.random.uniform(kb, (1, fan_out), jnp.float32, -bound, bound)
    return w, b


def make_twinq_params(key, state_dim, action_dim, hidden_dim):
    d_in = state_dim + action_dim
    keys = jax.random.split(key, 6)
    params = {}
    for name, ks in (("q1", keys[:3]), ("q2", keys[3:])):
        w1, b1 = _linear_init(ks[0], d_in, hidden_dim)
        w2, b2 = _linear_init(ks[1], hidden_dim, hidden_dim)
        w3, b3 = _linear_init(ks[2], hidden_dim, 1)
        params[name] = {"w1": w1, "b1": b1, "w2": w2, "b2": b2,
                        "w3": w3, "b3": b3}
    return params


def _reference(state, action, params):
    # Pure-JAX f32 reference with exact PyTorch TwinQ semantics.
    sa = jnp.concatenate([state, action], axis=1)

    def mlp(p):
        h = jnp.maximum(sa @ p["w1"] + p["b1"], 0.0)
        h = jnp.maximum(h @ p["w2"] + p["b2"], 0.0)
        return (h @ p["w3"] + p["b3"])[:, 0]

    return jnp.minimum(mlp(params["q1"]), mlp(params["q2"]))


if __name__ == "__main__":
    # Small shapes; H=32 exercises the block-diagonal fused layer-2 path.
    B, STATE_DIM, ACTION_DIM, HIDDEN = 8, 16, 16, 32

    key = jax.random.PRNGKey(0)
    k_state, k_action, k_params = jax.random.split(key, 3)

    state = jax.random.normal(k_state, (B, STATE_DIM), jnp.float32)
    action = jax.random.normal(k_action, (B, ACTION_DIM), jnp.float32)
    params = make_twinq_params(k_params, STATE_DIM, ACTION_DIM, HIDDEN)
    packed = pack_twinq_params(params)

    out = jax.block_until_ready(twin_q_forward(state, action, packed))
    ref = jax.block_until_ready(_reference(state, action, params))
    assert out.shape == (B,)
    # bf16 matmul inputs -> loosened tolerance vs. the f32 reference.
    assert jnp.allclose(out, ref, atol=5e-2, rtol=5e-2)

    # Module-default H=256 exercises the per-net layer-2 path; block_b=256
    # with B=600 exercises the multi-tile grid (grid=(3,)) + batch padding.
    B2, H2 = 600, 256
    params2 = make_twinq_params(jax.random.PRNGKey(2), STATE_DIM, ACTION_DIM, H2)
    packed2 = pack_twinq_params(params2)
    k_s2, k_a2 = jax.random.split(jax.random.PRNGKey(1))
    state2 = jax.random.normal(k_s2, (B2, STATE_DIM), jnp.float32)
    action2 = jax.random.normal(k_a2, (B2, ACTION_DIM), jnp.float32)
    out2 = jax.block_until_ready(
        twin_q_forward(state2, action2, packed2, block_b=256))
    ref2 = jax.block_until_ready(_reference(state2, action2, params2))
    assert out2.shape == (B2,)
    assert jnp.allclose(out2, ref2, atol=5e-2, rtol=5e-2)

    print("KERNEL_OK")
</pallas_src>

<mosaic_0001>
module attributes {stable_mosaic.version = 11 : i64} {
  func.func @_twinq_kernel_fused_l2(%arg0: i32, %arg1: memref<8x16xf32, #tpu.memory_space<vmem>>, %arg2: memref<8x16xf32, #tpu.memory_space<vmem>>, %arg3: memref<32x256xbf16, #tpu.memory_space<vmem>>, %arg4: memref<1x256xf32, #tpu.memory_space<vmem>>, %arg5: memref<256x256xbf16, #tpu.memory_space<vmem>>, %arg6: memref<1x256xf32, #tpu.memory_space<vmem>>, %arg7: memref<1x256xf32, #tpu.memory_space<vmem>>, %arg8: memref<1x2xf32, #tpu.memory_space<vmem>>, %arg9: memref<8x1xf32, #tpu.memory_space<vmem>>) attributes {dimension_semantics = [#tpu.dimension_semantics<parallel>], iteration_bounds = array<i64: 1>, scalar_prefetch = 0 : i64, scratch_operands = 0 : i64, tpu.core_type = #tpu.core_type<tc>, window_params = [{transform_indices = @transform_0, window_bounds = array<i64: 8, 16>}, {transform_indices = @transform_1, window_bounds = array<i64: 8, 16>}, {pipeline_mode = #tpu.pipeline_mode<synchronous>, transform_indices = @transform_2, window_bounds = array<i64: 32, 256>}, {pipeline_mode = #tpu.pipeline_mode<synchronous>, transform_indices = @transform_3, window_bounds = array<i64: 1, 256>}, {pipeline_mode = #tpu.pipeline_mode<synchronous>, transform_indices = @transform_4, window_bounds = array<i64: 256, 256>}, {pipeline_mode = #tpu.pipeline_mode<synchronous>, transform_indices = @transform_5, window_bounds = array<i64: 1, 256>}, {pipeline_mode = #tpu.pipeline_mode<synchronous>, transform_indices = @transform_6, window_bounds = array<i64: 1, 256>}, {pipeline_mode = #tpu.pipeline_mode<synchronous>, transform_indices = @transform_7, window_bounds = array<i64: 1, 2>}, {transform_indices = @transform_8, window_bounds = array<i64: 8, 1>}]} {
    %c0 = arith.constant 0 : index
    %c0_0 = arith.constant 0 : index
    %0 = vector.load %arg1[%c0, %c0_0] : memref<8x16xf32, #tpu.memory_space<vmem>>, vector<8x16xf32>
    %c0_1 = arith.constant 0 : index
    %c0_2 = arith.constant 0 : index
    %1 = vector.load %arg2[%c0_1, %c0_2] : memref<8x16xf32, #tpu.memory_space<vmem>>, vector<8x16xf32>
    %2 = tpu.concatenate %0, %1 in 1 : vector<8x16xf32>, vector<8x16xf32> -> vector<8x32xf32>
    %3 = arith.truncf %2 : vector<8x32xf32> to vector<8x32xbf16>
    %c0_3 = arith.constant 0 : index
    %c0_4 = arith.constant 0 : index
    %4 = vector.load %arg3[%c0_3, %c0_4] : memref<32x256xbf16, #tpu.memory_space<vmem>>, vector<32x256xbf16>
    %cst = arith.constant dense<0.000000e+00> : vector<8x256xf32>
    %5 = tpu.matmul %3, %4, %cst {dimension_numbers = #tpu.dot_dimension_numbers<[1], [0], [0], [1], [0, 0, 1, 1], [], []>} : vector<8x32xbf16>, vector<32x256xbf16>, vector<8x256xf32> -> vector<8x256xf32>
    %c0_5 = arith.constant 0 : index
    %c0_6 = arith.constant 0 : index
    %6 = vector.load %arg4[%c0_5, %c0_6] : memref<1x256xf32, #tpu.memory_space<vmem>>, vector<1x256xf32>
    %7 = vector.broadcast %6 : vector<1x256xf32> to vector<8x256xf32>
    %8 = arith.addf %5, %7 : vector<8x256xf32>
    %cst_7 = arith.constant 0.000000e+00 : f32
    %9 = vector.broadcast %cst_7 : f32 to vector<8x256xf32>
    %10 = arith.maximumf %8, %9 : vector<8x256xf32>
    %11 = arith.truncf %10 : vector<8x256xf32> to vector<8x256xbf16>
    %c0_8 = arith.constant 0 : index
    %c0_9 = arith.constant 0 : index
    %12 = vector.load %arg5[%c0_8, %c0_9] : memref<256x256xbf16, #tpu.memory_space<vmem>>, vector<256x256xbf16>
    %cst_10 = arith.constant dense<0.000000e+00> : vector<8x256xf32>
    %13 = tpu.matmul %11, %12, %cst_10 {dimension_numbers = #tpu.dot_dimension_numbers<[1], [0], [0], [1], [0, 0, 1, 1], [], []>} : vector<8x256xbf16>, vector<256x256xbf16>, vector<8x256xf32> -> vector<8x256xf32>
    %c0_11 = arith.constant 0 : index
    %c0_12 = arith.constant 0 : index
    %14 = vector.load %arg6[%c0_11, %c0_12] : memref<1x256xf32, #tpu.memory_space<vmem>>, vector<1x256xf32>
    %15 = vector.broadcast %14 : vector<1x256xf32> to vector<8x256xf32>
    %16 = arith.addf %13, %15 : vector<8x256xf32>
    %cst_13 = arith.constant 0.000000e+00 : f32
    %17 = vector.broadcast %cst_13 : f32 to vector<8x256xf32>
    %18 = arith.maximumf %16, %17 : vector<8x256xf32>
    %c0_14 = arith.constant 0 : index
    %c0_15 = arith.constant 0 : index
    %19 = vector.load %arg7[%c0_14, %c0_15] : memref<1x256xf32, #tpu.memory_space<vmem>>, vector<1x256xf32>
    %20 = vector.broadcast %19 : vector<1x256xf32> to vector<8x256xf32>
    %21 = arith.mulf %18, %20 : vector<8x256xf32>
    %22 = vector.extract_strided_slice %21 {offsets = [0, 0], sizes = [8, 128], strides = [1, 1]} : vector<8x256xf32> to vector<8x128xf32>
    %cst_16 = arith.constant dense<0.000000e+00> : vector<8xf32>
    %23 = vector.multi_reduction <add>, %22, %cst_16 [1] : vector<8x128xf32> to vector<8xf32>
    %24 = vector.shape_cast %23 : vector<8xf32> to vector<8x1xf32>
    %c0_17 = arith.constant 0 : index
    %c0_18 = arith.constant 0 : index
    %25 = vector.load %arg8[%c0_17, %c0_18] : memref<1x2xf32, #tpu.memory_space<vmem>>, vector<1x1xf32>
    %26 = vector.broadcast %25 : vector<1x1xf32> to vector<8x1xf32>
    %27 = arith.addf %24, %26 : vector<8x1xf32>
    %28 = vector.extract_strided_slice %21 {offsets = [0, 128], sizes = [8, 128], strides = [1, 1]} : vector<8x256xf32> to vector<8x128xf32>
    %cst_19 = arith.constant dense<0.000000e+00> : vector<8xf32>
    %29 = vector.multi_reduction <add>, %28, %cst_19 [1] : vector<8x128xf32> to vector<8xf32>
    %30 = vector.shape_cast %29 : vector<8xf32> to vector<8x1xf32>
    %c0_20 = arith.constant 0 : index
    %c1 = arith.constant 1 : index
    %31 = vector.load %arg8[%c0_20, %c1] : memref<1x2xf32, #tpu.memory_space<vmem>>, vector<1x1xf32>
    %32 = vector.broadcast %31 : vector<1x1xf32> to vector<8x1xf32>
    %33 = arith.addf %30, %32 : vector<8x1xf32>
    %34 = arith.minimumf %27, %33 : vector<8x1xf32>
    %c0_21 = arith.constant 0 : index
    %c0_22 = arith.constant 0 : index
    %35 = vector.load %arg9[%c0_21, %c0_22] : memref<8x1xf32, #tpu.memory_space<vmem>>, vector<8x1xf32>
    tpu.vector_store %arg9[%c0_21, %c0_22], %34 {strides = array<i32>} : memref<8x1xf32, #tpu.memory_space<vmem>>, vector<8x1xf32>,
    return
  }
  func.func @transform_0(%arg0: i32) -> (i32, i32) {
    %c0_i32 = arith.constant 0 : i32
    %c0_i32_0 = arith.constant 0 : i32
    return %arg0, %c0_i32 : i32, i32
  }
  func.func @transform_1(%arg0: i32) -> (i32, i32) {
    %c0_i32 = arith.constant 0 : i32
    %c0_i32_0 = arith.constant 0 : i32
    return %arg0, %c0_i32 : i32, i32
  }
  func.func @transform_2(%arg0: i32) -> (i32, i32) {
    %c0_i32 = arith.constant 0 : i32
    %c0_i32_0 = arith.constant 0 : i32
    %c0_i32_1 = arith.constant 0 : i32
    return %c0_i32, %c0_i32_0 : i32, i32
  }
  func.func @transform_3(%arg0: i32) -> (i32, i32) {
    %c0_i32 = arith.constant 0 : i32
    %c0_i32_0 = arith.constant 0 : i32
    %c0_i32_1 = arith.constant 0 : i32
    return %c0_i32, %c0_i32_0 : i32, i32
  }
  func.func @transform_4(%arg0: i32) -> (i32, i32) {
    %c0_i32 = arith.constant 0 : i32
    %c0_i32_0 = arith.constant 0 : i32
    %c0_i32_1 = arith.constant 0 : i32
    return %c0_i32, %c0_i32_0 : i32, i32
  }
  func.func @transform_5(%arg0: i32) -> (i32, i32) {
    %c0_i32 = arith.constant 0 : i32
    %c0_i32_0 = arith.constant 0 : i32
    %c0_i32_1 = arith.constant 0 : i32
    return %c0_i32, %c0_i32_0 : i32, i32
  }
  func.func @transform_6(%arg0: i32) -> (i32, i32) {
    %c0_i32 = arith.constant 0 : i32
    %c0_i32_0 = arith.constant 0 : i32
    %c0_i32_1 = arith.constant 0 : i32
    return %c0_i32, %c0_i32_0 : i32, i32
  }
  func.func @transform_7(%arg0: i32) -> (i32, i32) {
    %c0_i32 = arith.constant 0 : i32
    %c0_i32_0 = arith.constant 0 : i32
    %c0_i32_1 = arith.constant 0 : i32
    return %c0_i32, %c0_i32_0 : i32, i32
  }
  func.func @transform_8(%arg0: i32) -> (i32, i32) {
    %c0_i32 = arith.constant 0 : i32
    %c0_i32_0 = arith.constant 0 : i32
    return %arg0, %c0_i32 : i32, i32
  }
}

</mosaic_0001>

<bundles_post_ra>
// kernel: tpu_custom_call.1
= control target key start
LH: loop header
LB: loop body
LE: loop exit
PB: predicated region body
PF: predicated region fallthrough
CT: control target
= control target key end

     0   :  { %13 = vsyncpa [#allocation3], 0  ;;  %s858_s0 = inlined_call_operand.hbm [shape: f32[8,16], index: 0, kind: input, shape index: {}]   ;;  %s859_s1 = inlined_call_operand.hbm [shape: f32[8,16], index: 1, kind: input, shape index: {}]   ;;  %s860_s2 = inlined_call_operand.hbm [shape: bf16[32,256], index: 2, kind: input, shape index: {}]   ;;  %s861_s3 = inlined_call_operand.vmem [shape: f32[1,256], index: 3, kind: input, shape index: {}]   ;;  %s862_s4 = inlined_call_operand.hbm [shape: bf16[256,256], index: 4, kind: input, shape index: {}]   ;;  %s863_s5 = inlined_call_operand.vmem [shape: f32[1,256], index: 5, kind: input, shape index: {}]   ;;  %s864_s6 = inlined_call_operand.hbm [shape: f32[1,256], index: 6, kind: input, shape index: {}]   ;;  %s865_s7 = inlined_call_operand.vmem [shape: f32[1,2], index: 7, kind: input, shape index: {}]   ;;  %s866_s8 = inlined_call_operand.vmem [shape: f32[8,1], index: 8, kind: output, shape index: {}]  }
   0x1   :  { %14 = vsyncpa [#allocation5], 0  ;;  %s32_s29 = sshll.u32 %s859_s1, 4  ;;  %s33_s29 = int_to_ptr.hbm [resolvable:$true] %s32_s29 }
   0x2   :  { %15 = vsyncpa [#allocation8], 0  ;;  %s777_s30 = smov [#allocation4]   ;;  %s57_s12 = sshll.u32 %s862_s4, 4  ;;  %s58_s12 = int_to_ptr.hbm [resolvable:$true] %s57_s12 }
   0x3   :  { %s34_s9 = sshll.u32 %s777_s30, 4  ;;  %s778_s13 = smov [#allocation7]   ;;  %s35_s9 = int_to_ptr.vmem [resolvable:$true] %s34_s9 }
   0x4   :  { %37 = dma.hbm_to_vmem [thread:$0]  %s33_s29, 128, %s35_s9, [#allocation5]  }
   0x5   :  { %s59_s14 = sshll.u32 %s778_s13, 4  ;;  %s21_s17 = sshll.u32 %s858_s0, 4  ;;  %s60_s14 = int_to_ptr.vmem [resolvable:$true] %s59_s14  ;;  %s22_s17 = int_to_ptr.hbm [resolvable:$true] %s21_s17 }
   0x6   :  { %s779_s1 = smov 128   ;;  %s780_s18 = smov 8  }
   0x7   :  { %65 = dma.hbm_to_vmem [thread:$0]  %s58_s12, 4096, %s60_s14, [#allocation8], %s779_s1, %s779_s1, %s780_s18  }
   0x8   :  { %s42_s21 = sshll.u32 %s860_s2, 4  ;;  %s781_s22 = smov [#allocation2]   ;;  %s43_s21 = int_to_ptr.hbm [resolvable:$true] %s42_s21 }
   0x9   :  { %s23_s23 = sshll.u32 %s781_s22, 4  ;;  %s782_s4 = smov [#allocation6]   ;;  %s24_s23 = int_to_ptr.vmem [resolvable:$true] %s23_s23 }
   0xa   :  { %26 = dma.hbm_to_vmem [thread:$0]  %s22_s17, 128, %s24_s23, [#allocation3]  }
   0xb   :  { %s44_s24 = sshll.u32 %s782_s4, 4  ;;  %s73_s0 = sshll.u32 %s864_s6, 4  ;;  %s45_s24 = int_to_ptr.vmem [resolvable:$true] %s44_s24  ;;  %s74_s0 = int_to_ptr.hbm [resolvable:$true] %s73_s0 }
   0xc   :  { %50 = dma.hbm_to_vmem [thread:$0]  %s43_s21, 512, %s45_s24, [#allocation5], %s779_s1, %s779_s1, %s780_s18  }
   0xd   :  { %s783_s27 = smov [#allocation9]  }
   0xe   :  { %s75_s28 = sshll.u32 %s783_s27, 4  ;;  %s76_s28 = int_to_ptr.vmem [resolvable:$true] %s75_s28 }
   0xf   :  { %78 = dma.hbm_to_vmem [thread:$0]  %s74_s0, 32, %s76_s28, [#allocation8]  }
  0x10   :  { %771 = dma.done.wait [#allocation3], 128  }
  0x11   :  { %772 = vsyncadd [#allocation3], 4294967168 }
  0x12   :  { %773 = dma.done.wait [#allocation5], 640  }
  0x13   :  { %774 = vsyncadd [#allocation5], 4294966656 }
  0x14   :  { %775 = dma.done.wait [#allocation8], 4128  }
  0x15   :  { %776 = vsyncadd [#allocation8], 4294963168  ;;  %v103_v0 = vld [vmem:[#allocation4] sm:$0xff]  ;;  %v469_v1 = vld [vmem:[#allocation6 + $0x10] sm:$0xf]  ;;  %s784_s2 = smov 16  }
  0x16   :  { %v608_v2 = vld [vmem:[#allocation6 + $0x14] sm:$0xf0]  ;;  %105 = vrot.lane.b32.xlu0 %v103_v0, %s784_s2  ;;  %v607_v4 = vld [vmem:[#allocation6 + $0x14] sm:$0xf]  ;;  %v471_v5 = vld [vmem:[#allocation6 + $0x18] sm:$0xf0] }
  0x17   :  { %v470_v3 = vor.u32 %v608_v2, %v469_v1  ;;  %v474_v6 = vor.u32 %v607_v4, %v471_v5  ;;  %v461_v7 = vld [vmem:[#allocation6] sm:$0xf]  ;;  %v606_v8 = vld [vmem:[#allocation6 + $0x4] sm:$0xf0]  ;;  %v605_v9 = vld [vmem:[#allocation6 + $0x4] sm:$0xf] }
  0x18   :  { %v462_v10 = vor.u32 %v606_v8, %v461_v7  ;;  %v463_v11 = vld [vmem:[#allocation6 + $0x8] sm:$0xf0]  ;;  %v535_v13 = vld [vmem:[#allocation7 + $0x70] sm:$0xf]  ;;  %v624_v14 = vld [vmem:[#allocation7 + $0x74] sm:$0xf0] }
  0x19   :  { %151 = vmatpush.bf16.msra.mxu0 %v470_v3  ;;  %164 = vmatpush.bf16.msra.mxu1 %v474_v6  ;;  %v466_v12 = vor.u32 %v605_v9, %v463_v11  ;;  %v599_v15 = vld [vmem:[#allocation7 + $0xf0] sm:$0xf]  ;;  %v536_v16 = vor.u32 %v624_v14, %v535_v13  ;;  %v640_v17 = vld [vmem:[#allocation7 + $0xf4] sm:$0xf0]  ;;  %v623_v18 = vld [vmem:[#allocation7 + $0x74] sm:$0xf] }
  0x1a   :  { %v537_v19 = vld [vmem:[#allocation7 + $0x78] sm:$0xf0]  ;;  %v600_v20 = vor.u32 %v640_v17, %v599_v15  ;;  %v639_v22 = vld [vmem:[#allocation7 + $0xf4] sm:$0xf]  ;;  %v527_v24 = vld [vmem:[#allocation7 + $0x60] sm:$0xf] }
  0x1b   :  { %v540_v21 = vor.u32 %v623_v18, %v537_v19  ;;  %v601_v23 = vld [vmem:[#allocation7 + $0xf8] sm:$0xf0]  ;;  %373 = vmatpush.bf16.msra.mxu2 %v536_v16  ;;  %v622_v26 = vld [vmem:[#allocation7 + $0x64] sm:$0xf0]  ;;  %v591_v27 = vld [vmem:[#allocation7 + $0xe0] sm:$0xf] }
  0x1c   :  { %v604_v25 = vor.u32 %v639_v22, %v601_v23  ;;  %v638_v28 = vld [vmem:[#allocation7 + $0xe4] sm:$0xf0]  ;;  %386 = vmatpush.bf16.msra.mxu3 %v600_v20  ;;  %v528_v29 = vor.u32 %v622_v26, %v527_v24  ;;  %v621_v31 = vld [vmem:[#allocation7 + $0x64] sm:$0xf]  ;;  %v529_v32 = vld [vmem:[#allocation7 + $0x68] sm:$0xf0] }
  0x1d   :  { %152 = vmatpush.bf16.msra.mxu0 %v462_v10  ;;  %165 = vmatpush.bf16.msra.mxu1 %v466_v12  ;;  %v592_v30 = vor.u32 %v638_v28, %v591_v27  ;;  %v637_v33 = vld [vmem:[#allocation7 + $0xe4] sm:$0xf]  ;;  %v532_v34 = vor.u32 %v621_v31, %v529_v32  ;;  %v593_v35 = vld [vmem:[#allocation7 + $0xe8] sm:$0xf0]  ;;  %v519_v36 = vld [vmem:[#allocation7 + $0x50] sm:$0xf] }
  0x1e   :  { %v620_v37 = vld [vmem:[#allocation7 + $0x54] sm:$0xf0]  ;;  %v596_v38 = vor.u32 %v637_v33, %v593_v35  ;;  %v583_v39 = vld [vmem:[#allocation7 + $0xd0] sm:$0xf]  ;;  %v619_v41 = vld [vmem:[#allocation7 + $0x54] sm:$0xf] }
  0x1f   :  { %v636_v40 = vld [vmem:[#allocation7 + $0xd4] sm:$0xf0]  ;;  %374 = vmatpush.bf16.msra.mxu2 %v528_v29  ;;  %v520_v42 = vor.u32 %v620_v37, %v519_v36  ;;  %v521_v43 = vld [vmem:[#allocation7 + $0x58] sm:$0xf0]  ;;  %v635_v44 = vld [vmem:[#allocation7 + $0xd4] sm:$0xf] }
  0x20   :  { %v585_v45 = vld [vmem:[#allocation7 + $0xd8] sm:$0xf0]  ;;  %387 = vmatpush.bf16.msra.mxu3 %v592_v30  ;;  %v584_v46 = vor.u32 %v636_v40, %v583_v39  ;;  %v524_v47 = vor.u32 %v619_v41, %v521_v43  ;;  %v511_v48 = vld [vmem:[#allocation7 + $0x40] sm:$0xf]  ;;  %v618_v49 = vld [vmem:[#allocation7 + $0x44] sm:$0xf0] }
  0x21   :  { %399 = vmatpush.bf16.msrb.mxu0 %v540_v21  ;;  %412 = vmatpush.bf16.msrb.mxu1 %v604_v25  ;;  %v575_v50 = vld [vmem:[#allocation7 + $0xc0] sm:$0xf]  ;;  %v588_v51 = vor.u32 %v635_v44, %v585_v45  ;;  %v634_v52 = vld [vmem:[#allocation7 + $0xc4] sm:$0xf0]  ;;  %v617_v53 = vld [vmem:[#allocation7 + $0x44] sm:$0xf]  ;;  %v512_v57 = vor.u32 %v618_v49, %v511_v48 }
  0x22   :  { %v513_v54 = vld [vmem:[#allocation7 + $0x48] sm:$0xf0]  ;;  %v633_v55 = vld [vmem:[#allocation7 + $0xc4] sm:$0xf]  ;;  %v576_v58 = vor.u32 %v634_v52, %v575_v50  ;;  %v503_v60 = vld [vmem:[#allocation7 + $0x30] sm:$0xf] }
  0x23   :  { %v577_v56 = vld [vmem:[#allocation7 + $0xc8] sm:$0xf0]  ;;  %375 = vmatpush.bf16.msra.mxu2 %v520_v42  ;;  %v516_v59 = vor.u32 %v617_v53, %v513_v54  ;;  %v616_v61 = vld [vmem:[#allocation7 + $0x34] sm:$0xf0]  ;;  %v567_v62 = vld [vmem:[#allocation7 + $0xb0] sm:$0xf] }
  0x24   :  { %388 = vmatpush.bf16.msra.mxu3 %v584_v46  ;;  %v580_v63 = vor.u32 %v633_v55, %v577_v56  ;;  %v632_v0 = vld [vmem:[#allocation7 + $0xb4] sm:$0xf0]  ;;  %v615_v1 = vld [vmem:[#allocation7 + $0x34] sm:$0xf]  ;;  %v505_v2 = vld [vmem:[#allocation7 + $0x38] sm:$0xf0]  ;;  %v504_v5 = vor.u32 %v616_v61, %v503_v60 }
  0x25   :  { %400 = vmatpush.bf16.msrb.mxu0 %v532_v34  ;;  %413 = vmatpush.bf16.msrb.mxu1 %v596_v38  ;;  %v631_v3 = vld [vmem:[#allocation7 + $0xb4] sm:$0xf]  ;;  %v569_v4 = vld [vmem:[#allocation7 + $0xb8] sm:$0xf0]  ;;  %v568_v6 = vor.u32 %v632_v0, %v567_v62  ;;  %v508_v7 = vor.u32 %v615_v1, %v505_v2  ;;  %v495_v8 = vld [vmem:[#allocation7 + $0x20] sm:$0xf] }
  0x26   :  { %v614_v9 = vld [vmem:[#allocation7 + $0x24] sm:$0xf0]  ;;  %v559_v10 = vld [vmem:[#allocation7 + $0xa0] sm:$0xf]  ;;  %v572_v11 = vor.u32 %v631_v3, %v569_v4  ;;  %v613_v13 = vld [vmem:[#allocation7 + $0x24] sm:$0xf] }
  0x27   :  { %376 = vmatpush.bf16.msra.mxu2 %v512_v57  ;;  %v630_v12 = vld [vmem:[#allocation7 + $0xa4] sm:$0xf0]  ;;  %v497_v14 = vld [vmem:[#allocation7 + $0x28] sm:$0xf0]  ;;  %v629_v15 = vld [vmem:[#allocation7 + $0xa4] sm:$0xf]  ;;  %v496_v17 = vor.u32 %v614_v9, %v495_v8 }
  0x28   :  { %389 = vmatpush.bf16.msra.mxu3 %v576_v58  ;;  %v561_v16 = vld [vmem:[#allocation7 + $0xa8] sm:$0xf0]  ;;  %v560_v18 = vor.u32 %v630_v12, %v559_v10  ;;  %v500_v19 = vor.u32 %v613_v13, %v497_v14  ;;  %vm108_vm0 = vcmask 130048   ;;  %v102_v21 = vld [vmem:[#allocation2] sm:$0xff]  ;;  %vm141_vm1 = vcmask 261120   ;;  %s785_s10 = smov 127  }
  0x29   :  { %401 = vmatpush.bf16.msrb.mxu0 %v524_v47  ;;  %414 = vmatpush.bf16.msrb.mxu1 %v588_v51  ;;  %v564_v20 = vor.u32 %v629_v15, %v561_v16  ;;  %v487_v25 = vld [vmem:[#allocation7 + $0x10] sm:$0xf]  ;;  %v612_v26 = vld [vmem:[#allocation7 + $0x14] sm:$0xf0]  ;;  %v611_v30 = vld [vmem:[#allocation7 + $0x14] sm:$0xf] }
  0x2a   :  { %v551_v27 = vld [vmem:[#allocation7 + $0x90] sm:$0xf]  ;;  %v488_v28 = vor.u32 %v612_v26, %v487_v25  ;;  %v628_v29 = vld [vmem:[#allocation7 + $0x94] sm:$0xf0]  ;;  %v489_v31 = vld [vmem:[#allocation7 + $0x18] sm:$0xf0] }
  0x2b   :  { %377 = vmatpush.bf16.msra.mxu2 %v504_v5  ;;  %v552_v32 = vor.u32 %v628_v29, %v551_v27  ;;  %v492_v33 = vor.u32 %v611_v30, %v489_v31  ;;  %v627_v34 = vld [vmem:[#allocation7 + $0x94] sm:$0xf]  ;;  %v553_v35 = vld [vmem:[#allocation7 + $0x98] sm:$0xf0]  ;;  %v479_v37 = vld [vmem:[#allocation7] sm:$0xf] }
  0x2c   :  { %390 = vmatpush.bf16.msra.mxu3 %v568_v6  ;;  %v556_v36 = vor.u32 %v627_v34, %v553_v35  ;;  %v610_v38 = vld [vmem:[#allocation7 + $0x4] sm:$0xf0]  ;;  %v543_v39 = vld [vmem:[#allocation7 + $0x80] sm:$0xf]  ;;  %v609_v42 = vld [vmem:[#allocation7 + $0x4] sm:$0xf] }
  0x2d   :  { %402 = vmatpush.bf16.msrb.mxu0 %v516_v59  ;;  %415 = vmatpush.bf16.msrb.mxu1 %v580_v63  ;;  %v480_v40 = vor.u32 %v610_v38, %v479_v37  ;;  %v626_v41 = vld [vmem:[#allocation7 + $0x84] sm:$0xf0]  ;;  %v481_v43 = vld [vmem:[#allocation7 + $0x8] sm:$0xf0]  ;;  %v625_v46 = vld [vmem:[#allocation7 + $0x84] sm:$0xf] }
  0x2e   :  { %v544_v44 = vor.u32 %v626_v41, %v543_v39  ;;  %v484_v45 = vor.u32 %v609_v42, %v481_v43  ;;  %v545_v47 = vld [vmem:[#allocation7 + $0x88] sm:$0xf0]  ;;  %v115_v49 = vld [vmem:[%s861_s3] sm:$0x3]  ;;  %v427_v2 = vld [vmem:[#allocation9] sm:$0x3] }
  0x2f   :  { %378 = vmatpush.bf16.msra.mxu2 %v496_v17  ;;  %v548_v48 = vor.u32 %v625_v46, %v545_v47  ;;  %v117_v50 = vperm.slane %v115_v49, 0  ;;  %v118_v51 = vperm.slane %v115_v49, 1  ;;  %v207_v62 = vld [vmem:[%s863_s5] sm:$0x3]  ;;  %v430_v6 = vperm.slane %v427_v2, 1 }
  0x30   :  { %391 = vmatpush.bf16.msra.mxu3 %v560_v18  ;;  %v210_v63 = vperm.slane %v207_v62, 1  ;;  %v209_v4 = vperm.slane %v207_v62, 0  ;;  %v429_v15 = vperm.slane %v427_v2, 0  ;;  %vm450_vm2 = vcmask 7168  }
  0x31   :  { %403 = vmatpush.bf16.msrb.mxu0 %v508_v7  ;;  %416 = vmatpush.bf16.msrb.mxu1 %v572_v11 }
  0x33   :  { %379 = vmatpush.bf16.msra.mxu2 %v488_v28 }
  0x34   :  { %392 = vmatpush.bf16.msra.mxu3 %v552_v32 }
  0x35   :  { %404 = vmatpush.bf16.msrb.mxu0 %v500_v19  ;;  %417 = vmatpush.bf16.msrb.mxu1 %v564_v20  ;;  %v650_v20 = vld [vmem:[%s865_s7] ss:$0 sm:$0xff] }
  0x37   :  { %380 = vmatpush.bf16.msra.mxu2 %v480_v40 }
  0x38   :  { %393 = vmatpush.bf16.msra.mxu3 %v544_v44 }
  0x39   :  { %405 = vmatpush.bf16.msrb.mxu0 %v492_v33  ;;  %418 = vmatpush.bf16.msrb.mxu1 %v556_v36 }
  0x3d   :  { %406 = vmatpush.bf16.msrb.mxu0 %v484_v45  ;;  %419 = vmatpush.bf16.msrb.mxu1 %v548_v48 }
  0x88   :  { %v106_v22 = vpop.permute.xlu0 %105 }
  0x89   :  { %v109_v23 = vsel %vm108_vm0, %v102_v21, %v106_v22 }
  0x8a   :  { %v110_v24 = vpack.c.bf16 %v109_v23, %v109_v23 }
  0x8c   :  { %475 = vmatmul.msk.bf16.vlgmr.msra.gmra.mxu0 %vm141_vm1, %v110_v24  ;;  %476 = vmatmul.msk.bf16.vlgmr.msra.gmra.mxu1 %vm141_vm1, %v110_v24 }
 0x109   :  { %v154_v52 = vpop.f32.mrf.mxu0  ;;  %v167_v53 = vpop.f32.mrf.mxu1 }
 0x10a   :  { %v155_v54 = vadd.f32 %v154_v52, %v117_v50  ;;  %v168_v55 = vadd.f32 %v167_v53, %v118_v51 }
 0x10c   :  { %v171_v56 = vmax.f32 %v155_v54, 0.0  ;;  %v172_v57 = vmax.f32 %v168_v55, 0.0 }
 0x10e   :  { %v173_v58 = vpack.c.bf16 %v171_v56, %v171_v56  ;;  %v174_v59 = vpack.c.bf16 %v172_v57, %v172_v57 }
 0x110   :  { %381 = vmatmul.bf16.vlgmr.msra.gmra.mxu2 %v173_v58  ;;  %394 = vmatmul.bf16.vlgmr.msra.gmra.mxu3 %v174_v59 }
 0x111   :  { %407 = vmatmul.bf16.vlgmr.msrb.gmra.mxu0 %v173_v58  ;;  %420 = vmatmul.bf16.vlgmr.msrb.gmra.mxu1 %v174_v59  ;;  %v156_v60 = vpop.f32.mrf.mxu0  ;;  %v169_v61 = vpop.f32.mrf.mxu1 }
 0x18e   :  { %v408_v0 = vpop.f32.mrf.mxu0  ;;  %v421_v1 = vpop.f32.mrf.mxu1 }
 0x18f   :  { %v409_v3 = vadd.f32 %v408_v0, %v210_v63 }
 0x191   :  { %v422_v5 = vadd.f32 %v421_v1, %v409_v3 }
 0x193   :  { %v426_v7 = vmax.f32 %v422_v5, 0.0  ;;  %v382_v8 = vpop.f32.mrf.mxu2  ;;  %v395_v9 = vpop.f32.mrf.mxu3 }
 0x194   :  { %v383_v10 = vadd.f32 %v382_v8, %v209_v4 }
 0x195   :  { %v434_v11 = vmul.f32 %v430_v6, %v426_v7 }
 0x196   :  { %v396_v12 = vadd.f32 %v395_v9, %v383_v10  ;;  %v410_v13 = vpop.f32.mrf.mxu0  ;;  %v423_v14 = vpop.f32.mrf.mxu1 }
 0x197   :  { %442 = vadd.xlane.f32.xlu0 %v434_v11 }
 0x198   :  { %v425_v16 = vmax.f32 %v396_v12, 0.0 }
 0x19a   :  { %v433_v17 = vmul.f32 %v429_v15, %v425_v16 }
 0x19b   :  { %v384_v18 = vpop.f32.mrf.mxu2  ;;  %v397_v19 = vpop.f32.mrf.mxu3 }
 0x19c   :  { %435 = vadd.xlane.f32.xlu1 %v433_v17 }
 0x20a   :  { %v443_v21 = vpop.xlane.xlu0 %442 }
 0x20b   :  { %v444_v22 = vadd.f32 %v650_v20, %v443_v21 }
 0x20d   :  { %446 = vrot.lane.b32.xlu1 %v444_v22, %s785_s10 }
 0x20f   :  { %v436_v23 = vpop.xlane.xlu1 %435 }
 0x210   :  { %v441_v24 = vadd.f32 %v650_v20, %v436_v23 }
 0x27f   :  { %v447_v25 = vpop.permute.xlu1 %446 }
 0x280   :  { %v449_v26 = vmin.f32 %v441_v24, %v447_v25 }
 0x282   :  { %451 = vst.msk [vmem:[%s866_s8] sm:$0xff] %vm450_vm2, %v449_v26 }
 0x283   :  { %456 = vsyncpa [#allocation3], 1 }
 0x284   :  { %457 = vsyncpa [#allocation5], 1 }
 0x285   :  { %458 = vsyncpa [#allocation8], 1 }

</bundles_post_ra>
